<compile_context>
chip_gen: v5e
topology: v5e:2x2
jax: 0.10.0
libtpu: 0.0.40
codegen_flags: <defaults>
</compile_context>

<pallas_src>
import jax
import jax.numpy as jnp
from jax import lax
from jax.experimental import pallas as pl
from jax.experimental.pallas import tpu as pltpu

EPS = 1e-6  # stand-in for Consts.Eps

# Contract over the feature dim of both operands: [2B, d] x [C, d] -> [2B, C]
_DN = (((1,), (1,)), ((), ()))


def pqnet_ce_kernel(x_ref, q_ref, w_ref, b_ref, y_ref, loss_ref):
    # Single (un-gridded) invocation; every ref holds the full (small) array in VMEM,
    # except loss_ref which is a (1, 1) SMEM scalar output.
    x = x_ref[...]      # [B, d]  f32
    q = q_ref[...]      # [B, d]  f32
    w = w_ref[...]      # [C, d]  f32 (untransposed; dot_general contracts over d)
    b = b_ref[...]      # [1, C]  f32
    y = y_ref[...]      # [B, C]  f32

    # One fused final-layer matmul on the MXU: stack x/q along sublanes -> [2B, d].
    xq = jnp.concatenate([x, q], axis=0)                                           # [2B, d]
    logits = lax.dot_general(xq, w, _DN, preferred_element_type=jnp.float32) + b   # [2B, C]
    yy = jnp.concatenate([y, y], axis=0)                                           # [2B, C]

    n_rows = logits.shape[0]                 # 2B rows in the reference cat(...)
    n_elem = n_rows * logits.shape[1]        # 2B * C elements

    # Multi-label gate computed in-kernel. labels = cat(y, y), so testing y once is
    # equivalent to testing the concatenated labels.
    max_row_sum = jnp.max(jnp.sum(y, axis=-1, keepdims=True))
    is_multilabel = max_row_sum > (1.0 + EPS)

    @pl.when(jnp.logical_not(is_multilabel))
    def _():
        # cross_entropy with soft targets, mean over the 2B rows (stable log-softmax).
        m = jnp.max(logits, axis=-1, keepdims=True)
        z = logits - m
        lse = jnp.log(jnp.sum(jnp.exp(z), axis=-1, keepdims=True))
        ce = -jnp.sum(yy * (z - lse))
        loss_ref[0, 0] = ce / jnp.float32(n_rows)

    @pl.when(is_multilabel)
    def _():
        # binary_cross_entropy_with_logits, mean over all 2B*C elements (stable form).
        bce = jnp.sum(jnp.maximum(logits, 0.0) - logits * yy
                      + jnp.log1p(jnp.exp(-jnp.abs(logits))))
        loss_ref[0, 0] = bce / jnp.float32(n_elem)


def pqnet_ce_forward(x, q, y, weight, bias):
    """x, q: [B, d]; y: [B, C] float targets; weight: [C, d]; bias: [C]. Returns scalar loss."""
    B, D = x.shape
    C = weight.shape[0]
    b2 = bias.reshape(1, C)

    vmem_spec = pl.BlockSpec(memory_space=pltpu.MemorySpace.VMEM)

    loss = pl.pallas_call(
        pqnet_ce_kernel,
        out_shape=jax.ShapeDtypeStruct((1, 1), jnp.float32),
        in_specs=[vmem_spec,   # x
                  vmem_spec,   # q
                  vmem_spec,   # weight ([C, d], untransposed)
                  vmem_spec,   # bias   ([1, C])
                  vmem_spec],  # y (passed once)
        out_specs=pl.BlockSpec(memory_space=pltpu.MemorySpace.SMEM),
    )(x, q, weight, b2, y)
    return loss[0, 0]


if __name__ == "__main__":
    # Small shapes consistent with the module: B=8, d=32, numClasses=16.
    B, D, C = 8, 32, 16
    key = jax.random.PRNGKey(0)
    kx, kq, ky, kw, kb = jax.random.split(key, 5)

    x = jax.random.normal(kx, (B, D), dtype=jnp.float32)
    q = x + 0.1 * jax.random.normal(kq, (B, D), dtype=jnp.float32)  # quantized features

    labels_idx = jax.random.randint(ky, (B,), 0, C)
    y_onehot = jax.nn.one_hot(labels_idx, C, dtype=jnp.float32)                  # sum == 1 -> CE branch
    y_multi = jnp.clip(
        y_onehot + jax.nn.one_hot((labels_idx + 3) % C, C, dtype=jnp.float32),
        0.0, 1.0)                                                                # sum == 2 -> BCE branch

    # Deterministic Linear(d, numClasses) params (PyTorch-style uniform init bound).
    bound = 1.0 / jnp.sqrt(jnp.float32(D))
    weight = jax.random.uniform(kw, (C, D), minval=-bound, maxval=bound, dtype=jnp.float32)
    bias = jax.random.uniform(kb, (C,), minval=-bound, maxval=bound, dtype=jnp.float32)

    loss_ce = pqnet_ce_forward(x, q, y_onehot, weight, bias)
    jax.block_until_ready(loss_ce)
    loss_bce = pqnet_ce_forward(x, q, y_multi, weight, bias)
    jax.block_until_ready(loss_bce)

    # Pure-JAX reference (mirrors the PyTorch module exactly).
    def ref_loss(y):
        logits = jnp.concatenate([x, q], 0) @ weight.T + bias
        yy = jnp.concatenate([y, y], 0)
        if bool(jnp.any(jnp.sum(yy, -1) > 1.0 + EPS)):
            return jnp.mean(jnp.maximum(logits, 0.0) - logits * yy
                            + jnp.log1p(jnp.exp(-jnp.abs(logits))))
        return jnp.mean(-jnp.sum(yy * jax.nn.log_softmax(logits, -1), axis=-1))

    ce_ref = ref_loss(y_onehot)
    bce_ref = ref_loss(y_multi)
    assert jnp.allclose(loss_ce, ce_ref, rtol=1e-5, atol=1e-5), (loss_ce, ce_ref)
    assert jnp.allclose(loss_bce, bce_ref, rtol=1e-5, atol=1e-5), (loss_bce, bce_ref)

    print("KERNEL_OK")
</pallas_src>

<mosaic_0001>
module attributes {stable_mosaic.version = 11 : i64} {
  func.func @pqnet_ce_kernel(%arg0: memref<8x32xf32, #tpu.memory_space<vmem>>, %arg1: memref<8x32xf32, #tpu.memory_space<vmem>>, %arg2: memref<16x32xf32, #tpu.memory_space<vmem>>, %arg3: memref<1x16xf32, #tpu.memory_space<vmem>>, %arg4: memref<8x16xf32, #tpu.memory_space<vmem>>, %arg5: memref<1x1xf32, #tpu.memory_space<smem>>) attributes {dimension_semantics = [], scalar_prefetch = 0 : i64, scratch_operands = 0 : i64, tpu.core_type = #tpu.core_type<tc>} {
    %c0 = arith.constant 0 : index
    %c0_0 = arith.constant 0 : index
    %0 = vector.load %arg0[%c0, %c0_0] : memref<8x32xf32, #tpu.memory_space<vmem>>, vector<8x32xf32>
    %c0_1 = arith.constant 0 : index
    %c0_2 = arith.constant 0 : index
    %1 = vector.load %arg1[%c0_1, %c0_2] : memref<8x32xf32, #tpu.memory_space<vmem>>, vector<8x32xf32>
    %c0_3 = arith.constant 0 : index
    %c0_4 = arith.constant 0 : index
    %2 = vector.load %arg2[%c0_3, %c0_4] : memref<16x32xf32, #tpu.memory_space<vmem>>, vector<16x32xf32>
    %c0_5 = arith.constant 0 : index
    %c0_6 = arith.constant 0 : index
    %3 = vector.load %arg3[%c0_5, %c0_6] : memref<1x16xf32, #tpu.memory_space<vmem>>, vector<1x16xf32>
    %c0_7 = arith.constant 0 : index
    %c0_8 = arith.constant 0 : index
    %4 = vector.load %arg4[%c0_7, %c0_8] : memref<8x16xf32, #tpu.memory_space<vmem>>, vector<8x16xf32>
    %5 = tpu.concatenate %0, %1 in 0 : vector<8x32xf32>, vector<8x32xf32> -> vector<16x32xf32>
    %cst = arith.constant dense<0.000000e+00> : vector<16x16xf32>
    %6 = tpu.matmul %5, %2, %cst {dimension_numbers = #tpu.dot_dimension_numbers<[1], [1], [0], [0], [0, 0, 1, 0], [], []>} : vector<16x32xf32>, vector<16x32xf32>, vector<16x16xf32> -> vector<16x16xf32>
    %7 = vector.broadcast %3 : vector<1x16xf32> to vector<16x16xf32>
    %8 = arith.addf %6, %7 : vector<16x16xf32>
    %9 = tpu.concatenate %4, %4 in 0 : vector<8x16xf32>, vector<8x16xf32> -> vector<16x16xf32>
    %cst_9 = arith.constant dense<0.000000e+00> : vector<8xf32>
    %10 = vector.multi_reduction <add>, %4, %cst_9 [1] : vector<8x16xf32> to vector<8xf32>
    %11 = vector.shape_cast %10 : vector<8xf32> to vector<8x1xf32>
    %12 = vector.shape_cast %11 : vector<8x1xf32> to vector<1x8x1xf32>
    %cst_10 = arith.constant dense<0xFF800000> : vector<1xf32>
    %13 = vector.multi_reduction <maximumf>, %12, %cst_10 [1, 2] : vector<1x8x1xf32> to vector<1xf32>
    %14 = vector.shape_cast %13 : vector<1xf32> to vector<1x1x1xf32>
    %15 = vector.extract %14[0, 0, 0] : f32 from vector<1x1x1xf32>
    %cst_11 = arith.constant 1.00000095 : f32
    %16 = arith.cmpf ogt, %15, %cst_11 : f32
    %true = arith.constant true
    %17 = arith.xori %16, %true : i1
    %18 = arith.extui %17 : i1 to i32
    %c0_i32 = arith.constant 0 : i32
    %19 = arith.cmpi ne, %18, %c0_i32 : i32
    scf.if %19 {
      %cst_13 = arith.constant dense<0xFF800000> : vector<16xf32>
      %22 = vector.multi_reduction <maximumf>, %8, %cst_13 [1] : vector<16x16xf32> to vector<16xf32>
      %23 = vector.shape_cast %22 : vector<16xf32> to vector<16x1xf32>
      %24 = vector.broadcast %23 : vector<16x1xf32> to vector<16x16xf32>
      %25 = arith.subf %8, %24 : vector<16x16xf32>
      %26 = math.exp %25 : vector<16x16xf32>
      %cst_14 = arith.constant dense<0.000000e+00> : vector<16xf32>
      %27 = vector.multi_reduction <add>, %26, %cst_14 [1] : vector<16x16xf32> to vector<16xf32>
      %28 = vector.shape_cast %27 : vector<16xf32> to vector<16x1xf32>
      %29 = math.log %28 : vector<16x1xf32>
      %30 = vector.broadcast %29 : vector<16x1xf32> to vector<16x16xf32>
      %31 = arith.subf %25, %30 : vector<16x16xf32>
      %32 = arith.mulf %9, %31 : vector<16x16xf32>
      %33 = vector.shape_cast %32 : vector<16x16xf32> to vector<1x16x16xf32>
      %cst_15 = arith.constant dense<0.000000e+00> : vector<1xf32>
      %34 = vector.multi_reduction <add>, %33, %cst_15 [1, 2] : vector<1x16x16xf32> to vector<1xf32>
      %35 = vector.shape_cast %34 : vector<1xf32> to vector<1x1x1xf32>
      %36 = vector.extract %35[0, 0, 0] : f32 from vector<1x1x1xf32>
      %cst_16 = arith.constant 0.000000e+00 : f32
      %37 = arith.subf %cst_16, %36 : f32
      %cst_17 = arith.constant 1.600000e+01 : f32
      %38 = arith.divf %37, %cst_17 : f32
      %c0_18 = arith.constant 0 : index
      %c0_19 = arith.constant 0 : index
      %39 = memref.load %arg5[%c0_18, %c0_19] : memref<1x1xf32, #tpu.memory_space<smem>>
      memref.store %38, %arg5[%c0_18, %c0_19] : memref<1x1xf32, #tpu.memory_space<smem>>
    } else {
    }
    %20 = arith.extui %16 : i1 to i32
    %c0_i32_12 = arith.constant 0 : i32
    %21 = arith.cmpi ne, %20, %c0_i32_12 : i32
    scf.if %21 {
      %cst_13 = arith.constant 0.000000e+00 : f32
      %22 = vector.broadcast %cst_13 : f32 to vector<16x16xf32>
      %23 = arith.maximumf %8, %22 : vector<16x16xf32>
      %24 = arith.mulf %8, %9 : vector<16x16xf32>
      %25 = arith.subf %23, %24 : vector<16x16xf32>
      %26 = math.absf %8 : vector<16x16xf32>
      %cst_14 = arith.constant 0.000000e+00 : f32
      %27 = vector.broadcast %cst_14 : f32 to vector<16x16xf32>
      %28 = arith.subf %27, %26 : vector<16x16xf32>
      %29 = math.exp %28 : vector<16x16xf32>
      %30 = math.log1p %29 : vector<16x16xf32>
      %31 = arith.addf %25, %30 : vector<16x16xf32>
      %32 = vector.shape_cast %31 : vector<16x16xf32> to vector<1x16x16xf32>
      %cst_15 = arith.constant dense<0.000000e+00> : vector<1xf32>
      %33 = vector.multi_reduction <add>, %32, %cst_15 [1, 2] : vector<1x16x16xf32> to vector<1xf32>
      %34 = vector.shape_cast %33 : vector<1xf32> to vector<1x1x1xf32>
      %35 = vector.extract %34[0, 0, 0] : f32 from vector<1x1x1xf32>
      %cst_16 = arith.constant 2.560000e+02 : f32
      %36 = arith.divf %35, %cst_16 : f32
      %c0_17 = arith.constant 0 : index
      %c0_18 = arith.constant 0 : index
      %37 = memref.load %arg5[%c0_17, %c0_18] : memref<1x1xf32, #tpu.memory_space<smem>>
      memref.store %36, %arg5[%c0_17, %c0_18] : memref<1x1xf32, #tpu.memory_space<smem>>
    } else {
    }
    return
  }
}

</mosaic_0001>

<bundles_post_ra>
// kernel: tpu_custom_call.1
= control target key start
LH: loop header
LB: loop body
LE: loop exit
PB: predicated region body
PF: predicated region fallthrough
CT: control target
= control target key end

     0   :  { %10 = vsyncpa [#allocation3], 0  ;;  %s522_s0 = inlined_call_operand.hbm [shape: f32[8,32], index: 0, kind: input, shape index: {}]   ;;  %s523_s1 = inlined_call_operand.hbm [shape: f32[8,32], index: 1, kind: input, shape index: {}]   ;;  %s524_s2 = inlined_call_operand.hbm [shape: f32[16,32], index: 2, kind: input, shape index: {}]   ;;  %s525_s3 = inlined_call_operand.vmem [shape: f32[1,16], index: 3, kind: input, shape index: {}]   ;;  %s526_s4 = inlined_call_operand.hbm [shape: f32[8,16], index: 4, kind: input, shape index: {}]   ;;  %s527_s5 = inlined_call_operand.hbm [shape: f32[1,1], index: 5, kind: output, shape index: {}]  }
   0x1   :  { %11 = vsyncpa [#allocation6], 0 }
   0x2   :  { %12 = vsyncpa [#allocation9], 0  ;;  %s30_s20 = sshll.u32 %s523_s1, 4  ;;  %s31_s20 = int_to_ptr.hbm [resolvable:$true] %s30_s20 }
   0x3   :  { %13 = vsyncpa [#allocation4], 0  ;;  %s428_s21 = smov [#allocation5]   ;;  %s19_s25 = sshll.u32 %s522_s0, 4  ;;  %s20_s25 = int_to_ptr.hbm [resolvable:$true] %s19_s25 }
   0x4   :  { %s32_s22 = sshll.u32 %s428_s21, 4  ;;  %s429_s26 = smov [#allocation2]   ;;  %s33_s22 = int_to_ptr.vmem [resolvable:$true] %s32_s22 }
   0x5   :  { %35 = dma.hbm_to_vmem [thread:$0]  %s31_s20, 128, %s33_s22, [#allocation6]  }
   0x6   :  { %s21_s27 = sshll.u32 %s429_s26, 4  ;;  %s40_s30 = sshll.u32 %s524_s2, 4  ;;  %s22_s27 = int_to_ptr.vmem [resolvable:$true] %s21_s27  ;;  %s41_s30 = int_to_ptr.hbm [resolvable:$true] %s40_s30 }
   0x7   :  { %24 = dma.hbm_to_vmem [thread:$0]  %s20_s25, 128, %s22_s27, [#allocation3]  }
   0x8   :  { %s430_s1 = smov [#allocation7]   ;;  %s56_s9 = sshll.u32 %s526_s4, 4  ;;  %s57_s9 = int_to_ptr.hbm [resolvable:$true] %s56_s9 }
   0x9   :  { %s42_s6 = sshll.u32 %s430_s1, 4  ;;  %s431_s10 = smov 128   ;;  %s43_s6 = int_to_ptr.vmem [resolvable:$true] %s42_s6 }
   0xa   :  { %s432_s0 = smov 8   ;;  %s433_s11 = smov [#allocation8]  }
   0xb   :  { %48 = dma.hbm_to_vmem [thread:$0]  %s41_s30, 256, %s43_s6, [#allocation6], %s431_s10, %s431_s10, %s432_s0  }
   0xc   :  { %s58_s12 = sshll.u32 %s433_s11, 4  ;;  %s59_s12 = int_to_ptr.vmem [resolvable:$true] %s58_s12 }
   0xd   :  { %61 = dma.hbm_to_vmem [thread:$0]  %s57_s9, 128, %s59_s12, [#allocation9]  }
   0xe   :  { %420 = dma.done.wait [#allocation3], 128  }
   0xf   :  { %421 = vsyncadd [#allocation3], 4294967168 }
  0x10   :  { %422 = dma.done.wait [#allocation6], 384  }
  0x11   :  { %423 = vsyncadd [#allocation6], 4294966912 }
  0x12   :  { %424 = dma.done.wait [#allocation9], 128  }
  0x13   :  { %425 = vsyncadd [#allocation9], 4294967168  ;;  %vm123_vm0 = vcmask 130048   ;;  %vm87_vm1 = vcmask 261120   ;;  %v479_v0 = vld [vmem:[#allocation8] sm:$0xff]  ;;  %v81_v1 = vld [vmem:[#allocation7 + $0x8] sm:$0xff] }
  0x14   :  { %v124_v2 = vsel %vm123_vm0, %v479_v0, 0.0  ;;  %266 = vmatpush.xpose.msk.msra.mxu0 %vm87_vm1, %v81_v1  ;;  %270 = vmatpush.xpose.msk.msra.mxu1 %vm87_vm1, %v81_v1  ;;  %v80_v3 = vld [vmem:[#allocation7] sm:$0xff]  ;;  %v78_v4 = vld [vmem:[#allocation2] sm:$0xff]  ;;  %v79_v5 = vld [vmem:[#allocation5] sm:$0xff] }
  0x15   :  { %125 = vadd.xlane.f32.xlu0 %v124_v2  ;;  %v291_v13 = vld [vmem:[%s525_s3] ss:$0 sm:$0xff] }
  0x18   :  { %267 = vmatpush.xpose.msk.msra.mxu0 %vm87_vm1, %v80_v3  ;;  %271 = vmatpush.xpose.msk.msra.mxu1 %vm87_vm1, %v80_v3 }
  0x1b   :  { %268 = vmatmul.msk.f32.vlgmr.msra.gmra.mxu0 %vm87_vm1, %v78_v4  ;;  %269 = vmatmul.msk.f32.vlgmr.msra.gmra.mxu1 %vm87_vm1, %v79_v5 }
  0x88   :  { %v126_v6 = vpop.xlane.xlu0 %125 }
  0x89   :  { %v127_v7 = vrot.slane %v126_v6, 4 }
  0x8b   :  { %v128_v8 = vmax.f32 %v126_v6, %v127_v7 }
  0x8d   :  { %v129_v9 = vrot.slane %v128_v8, 2 }
  0x8f   :  { %v130_v10 = vmax.f32 %v128_v8, %v129_v9 }
  0x91   :  { %v131_v11 = vrot.slane %v130_v10, 1 }
  0x93   :  { %v132_v12 = vmax.f32 %v130_v10, %v131_v11 }
  0x95   :  { %272 = vpush %v132_v12 }
  0x98   :  { %v117_v14 = vpop.f32.mrf.mxu0  ;;  %v120_v15 = vpop.f32.mrf.mxu1 }
  0x99   :  { %v486_v16 = vadd.f32 %v291_v13, %v117_v14  ;;  %v488_v17 = vadd.f32 %v291_v13, %v120_v15 }
  0xc6   :  { %s490_s13 = spop %272 }
  0xc7   :  { %p134_p0 = scmp.gt.f32.partialorder %s490_s13, 1.000001 }
  0xc8   :  { %v144_v18 = vand.u32 (%p134_p0), 2147483647, %v486_v16  ;;  %v145_v19 = vand.u32 (%p134_p0), 2147483647, %v488_v17  ;;  %v138_v31 = vmax.f32 (%p134_p0), %v486_v16, 0.0  ;;  %v140_v32 = vmul.f32 (%p134_p0), %v486_v16, %v479_v0 }
  0xc9   :  { %137 = sbr.rel (!%p134_p0) target bundleno = 413 (0x19d), region = 41  ;;  %v139_v35 = vmax.f32 (%p134_p0), %v488_v17, 0.0  ;;  %v141_v36 = vmul.f32 (%p134_p0), %v488_v17, %v479_v0  ;;  %v434_v53 = vmov (%p134_p0), 256.0  }
  0xca   :  { %v146_v20 = vsub.f32 (%p134_p0), 0.0, %v144_v18  ;;  %v147_v21 = vsub.f32 (%p134_p0), 0.0, %v145_v19  ;;  %v142_v40 = vsub.f32 (%p134_p0), %v138_v31, %v140_v32 }
  0xcb   :  { %v143_v43 = vsub.f32 (%p134_p0), %v139_v35, %v141_v36 }
  0xcc   :  { %v148_v22 = vmul.f32 (%p134_p0), 1.442695, %v146_v20  ;;  %v150_v23 = vmul.f32 (%p134_p0), 1.442695, %v147_v21 }
  0xce   :  { %292 = vpow2.f32 %v148_v22 }
  0xcf   :  { %294 = vpow2.f32 %v150_v23 }
  0xd4   :  { %v293_v24 = vpop.eup %292 }
  0xd5   :  { %v295_v25 = vpop.eup %294  ;;  %v152_v26 = vadd.f32 1.0, %v293_v24  ;;  %v155_v27 = vmul.f32 -0.5, %v293_v24  ;;  %v158_v33 = vand.u32 2147483647, %v293_v24 }
  0xd6   :  { %v161_v28 = vadd.f32 1.0, %v295_v25  ;;  %v164_v29 = vmul.f32 -0.5, %v295_v25  ;;  %v167_v37 = vand.u32 2147483647, %v295_v25 }
  0xd7   :  { %296 = vlog2.f32 %v152_v26  ;;  %v156_v30 = vadd.f32 1.0, %v155_v27  ;;  %vm159_vm2 = vcmp.lt.f32.partialorder %v158_v33, 0.0004427343 }
  0xd8   :  { %298 = vlog2.f32 %v161_v28  ;;  %v165_v34 = vadd.f32 1.0, %v164_v29  ;;  %vm168_vm3 = vcmp.lt.f32.partialorder %v167_v37, 0.0004427343 }
  0xd9   :  { %v157_v38 = vmul.f32 %v293_v24, %v156_v30  ;;  %300 = vrcp.f32 %v434_v53 }
  0xda   :  { %v166_v41 = vmul.f32 %v295_v25, %v165_v34 }
  0xdd   :  { %v297_v39 = vpop.eup %296 }
  0xde   :  { %v299_v42 = vpop.eup %298  ;;  %v154_v44 = vmul.f32 0.6931472, %v297_v39 }
  0xdf   :  { %v163_v45 = vmul.f32 0.6931472, %v299_v42  ;;  %v301_v54 = vpop.eup %300 }
  0xe0   :  { %v160_v46 = vsel %vm159_vm2, %v157_v38, %v154_v44  ;;  %v185_v55 = vmul.f32 256.0, %v301_v54  ;;  %vm189_vm4 = vweird.f32 %v301_v54 }
  0xe1   :  { %v169_v47 = vsel %vm168_vm3, %v166_v41, %v163_v45  ;;  %v170_v48 = vadd.f32 %v160_v46, %v142_v40 }
  0xe2   :  { %v171_v49 = vadd.f32 %v169_v47, %v143_v43  ;;  %v186_v56 = vsub.f32 1.0, %v185_v55 }
  0xe3   :  { %v172_v50 = vsel %vm123_vm0, %v170_v48, 0.0 }
  0xe4   :  { %v173_v51 = vsel %vm123_vm0, %v171_v49, 0.0  ;;  %v187_v60 = vmul.f32 %v301_v54, %v186_v56 }
  0xe5   :  { %v174_v52 = vadd.f32 %v173_v51, %v172_v50 }
  0xe6   :  { %v188_v63 = vadd.f32 %v301_v54, %v187_v60 }
  0xe7   :  { %175 = vadd.xlane.f32.xlu0 %v174_v52 }
  0xe8   :  { %v190_v3 = vsel %vm189_vm4, %v301_v54, %v188_v63 }
 0x15a   :  { %v176_v57 = vpop.xlane.xlu0 %175 }
 0x15b   :  { %v177_v58 = vrot.slane %v176_v57, 4 }
 0x15d   :  { %v178_v59 = vadd.f32 %v177_v58, %v176_v57 }
 0x15f   :  { %v179_v61 = vrot.slane %v178_v59, 2 }
 0x161   :  { %v180_v62 = vadd.f32 %v179_v61, %v178_v59 }
 0x163   :  { %v181_v1 = vrot.slane %v180_v62, 1 }
 0x165   :  { %v182_v2 = vadd.f32 %v181_v1, %v180_v62 }
 0x167   :  { %274 = vpush %v182_v2 }
 0x168   :  { %276 = vpush %v190_v3 }
 0x198   :  { %s275_s3 = spop %274 }
 0x199   :  { %s277_s14 = spop %276 }
 0x19a   :  { %s192_s15 = smul.f32 %s277_s14, %s275_s3 }
 0x19c   :  { %194 = sst [smem:[#allocation10]] %s192_s15 }
 0x19d PF:  { %197 = sbr.rel (%p134_p0) target bundleno = 870 (0x366), region = 45 }
 0x1a2   :  { %v198_v4 = vsel %vm123_vm0, %v486_v16, -inf  ;;  %v201_v5 = vsel %vm123_vm0, %v488_v17, -inf  ;;  %v435_v29 = vmov 16.0  }
 0x1a3   :  { %199 = vmax.xlane.f32.xlu0 %v198_v4 }
 0x1ab   :  { %202 = vmax.xlane.f32.xlu0 %v201_v5 }
 0x216   :  { %v200_v6 = vpop.xlane.xlu0 %199 }
 0x217   :  { %v204_v7 = vsub.f32 %v486_v16, %v200_v6 }
 0x219   :  { %v206_v8 = vmul.f32 1.442695, %v204_v7 }
 0x21b   :  { %302 = vpow2.f32 %v206_v8 }
 0x21e   :  { %v203_v9 = vpop.xlane.xlu0 %202 }
 0x21f   :  { %v205_v10 = vsub.f32 %v488_v17, %v203_v9 }
 0x221   :  { %v303_v11 = vpop.eup %302  ;;  %v208_v12 = vmul.f32 1.442695, %v205_v10 }
 0x222   :  { %v210_v13 = vsel %vm123_vm0, %v303_v11, 0.0 }
 0x223   :  { %211 = vadd.xlane.f32.xlu1 %v210_v13  ;;  %304 = vpow2.f32 %v208_v12 }
 0x229   :  { %v305_v14 = vpop.eup %304 }
 0x22a   :  { %v213_v15 = vsel %vm123_vm0, %v305_v14, 0.0 }
 0x22b   :  { %214 = vadd.xlane.f32.xlu1 %v213_v15 }
 0x296   :  { %v212_v18 = vpop.xlane.xlu1 %211 }
 0x297   :  { %306 = vlog2.f32 %v212_v18 }
 0x29d   :  { %v307_v19 = vpop.eup %306 }
 0x29e   :  { %v215_v20 = vpop.xlane.xlu1 %214  ;;  %v217_v16 = vmul.f32 0.6931472, %v307_v19 }
 0x29f   :  { %308 = vlog2.f32 %v215_v20 }
 0x2a0   :  { %v220_v21 = vsub.f32 %v204_v7, %v217_v16  ;;  %310 = vrcp.f32 %v435_v29 }
 0x2a2   :  { %v222_v24 = vmul.f32 %v220_v21, %v479_v0 }
 0x2a4   :  { %v224_v26 = vsel %vm123_vm0, %v222_v24, 0.0 }
 0x2a5   :  { %v309_v22 = vpop.eup %308 }
 0x2a6   :  { %v219_v23 = vmul.f32 0.6931472, %v309_v22  ;;  %v311_v30 = vpop.eup %310 }
 0x2a7   :  { %v238_v31 = vmul.f32 16.0, %v311_v30  ;;  %vm242_vm5 = vweird.f32 %v311_v30 }
 0x2a8   :  { %v221_v17 = vsub.f32 %v205_v10, %v219_v23 }
 0x2a9   :  { %v239_v32 = vsub.f32 1.0, %v238_v31 }
 0x2aa   :  { %v223_v25 = vmul.f32 %v221_v17, %v479_v0 }
 0x2ab   :  { %v240_v36 = vmul.f32 %v311_v30, %v239_v32 }
 0x2ac   :  { %v225_v27 = vsel %vm123_vm0, %v223_v25, 0.0 }
 0x2ad   :  { %v226_v28 = vadd.f32 %v225_v27, %v224_v26  ;;  %v241_v39 = vadd.f32 %v311_v30, %v240_v36 }
 0x2af   :  { %227 = vadd.xlane.f32.xlu2 %v226_v28  ;;  %v243_v41 = vsel %vm242_vm5, %v311_v30, %v241_v39 }
 0x322   :  { %v228_v33 = vpop.xlane.xlu2 %227 }
 0x323   :  { %v229_v34 = vrot.slane %v228_v33, 4 }
 0x325   :  { %v230_v35 = vadd.f32 %v229_v34, %v228_v33 }
 0x327   :  { %v231_v37 = vrot.slane %v230_v35, 2 }
 0x329   :  { %v232_v38 = vadd.f32 %v231_v37, %v230_v35 }
 0x32b   :  { %v233_v0 = vrot.slane %v232_v38, 1 }
 0x32d   :  { %v234_v40 = vadd.f32 %v233_v0, %v232_v38 }
 0x32f   :  { %278 = vpush %v234_v40 }
 0x330   :  { %280 = vpush %v243_v41 }
 0x360   :  { %s279_s16 = spop %278 }
 0x361   :  { %s236_s17 = ssub.f32 0.0, %s279_s16  ;;  %s281_s18 = spop %280 }
 0x363   :  { %s245_s19 = smul.f32 %s281_s18, %s236_s17 }
 0x365   :  { %247 = sst [smem:[#allocation10]] %s245_s19 }
 0x366 PF:  { %s253_s22 = sshll.u32 %s527_s5, 4  ;;  %s436_s23 = smov [#allocation10]   ;;  %s254_s22 = int_to_ptr.hbm [resolvable:$true] %s253_s22 }
 0x367   :  { %256 = dma.smem_to_hbm %s436_s23, 16, %s254_s22, [#allocation4]  }
 0x368   :  { %426 = dma.done.wait [#allocation4], 16  }
 0x369   :  { %427 = vsyncadd [#allocation4], 4294967280 }
 0x36a   :  { %261 = sfence }
 0x36b   :  { %262 = vsyncpa [#allocation3], 1 }
 0x36c   :  { %263 = vsyncpa [#allocation6], 1 }
 0x36d   :  { %264 = vsyncpa [#allocation9], 1 }
 0x36e   :  { %265 = vsyncpa [#allocation4], 1 }

</bundles_post_ra>
